<compile_context>
chip_gen: v6e
topology: v6e:2x2x1
jax: 0.10.0
libtpu: 0.0.40
codegen_flags: <defaults>
</compile_context>

<pallas_src>
import jax
import jax.numpy as jnp
from jax import lax
from jax.experimental import pallas as pl
from jax.experimental.pallas import tpu as pltpu

EPS = 1e-15
_MiB = 1024 * 1024
_MAX_BLOCK_B = 8


def _vmem_limits():
    """Generation-aware scoped-VMEM request, block budget and megacore heuristic."""
    cap = 64 * _MiB  # conservative fallback = v7x per-TensorCore VMEM
    try:
        cap = int(getattr(pltpu.get_tpu_info(), "vmem_capacity_bytes", cap))
    except Exception:
        pass
    # v7x (64 MiB/TC): ~36 MiB scoped; v5e/v6e (128 MiB): ~100 MiB scoped.
    limit = int(min(max(cap - 28 * _MiB, 32 * _MiB), 100 * _MiB))
    budget = limit - 6 * _MiB
    # Heuristic: small per-core VMEM => v7x-class chip, 2 TensorCores share the
    # "parallel" grid axis, so keep grid_b >= 2 and even there.
    multi_core = cap <= 96 * _MiB
    return limit, budget, multi_core


def _vmem_block_bytes(bb, N, F, H, K, adj_item, copy_item):
    HK = H + K
    per_elem = (2 * N * N * adj_item            # adj input window (double-buffered)
                + 2 * N * F * 4                 # x input window (double-buffered)
                + 2 * (K * H + 2 * K * K) * 4)  # output windows (double-buffered)
    step_work = (N * N * copy_item              # at most one live dtype-converted adj copy
                 + bb * N * HK * 4              # fused x@W scratch
                 + 6 * N * HK * 4               # one element's live f32 temporaries
                 + 4 * N * N)                   # mask / spill slack
    fixed = 2 * (F * HK + HK) * 4 + _MiB
    return bb * per_elem + step_work + fixed


def _choose_block_b(B, N, F, H, K, adj_item, copy_item, budget, multi_core):
    if _vmem_block_bytes(1, N, F, H, K, adj_item, copy_item) > budget:
        # TODO(synk): add an N-tiled variant (second grid axis over adj row tiles with
        #             k-style accumulation) for graphs whose adjacency exceeds VMEM.
        raise ValueError(
            f"DiffPool kernel: one batch element (N={N}) exceeds the VMEM budget of "
            f"{budget} bytes; an N-tiled kernel variant is required.")
    best = 1
    for bb in range(1, min(B, _MAX_BLOCK_B) + 1):
        if B % bb:
            continue
        steps = B // bb
        if multi_core and B >= 2 and (steps < 2 or steps % 2):
            continue  # keep both v7x TensorCores busy and balanced
        if _vmem_block_bytes(bb, N, F, H, K, adj_item, copy_item) <= budget:
            best = bb
    return best


def _build_kernel(N, H, K, block_b, matmul_dtype, assume_binary_adj, approx_recip):
    HK = H + K
    mxu_dtype = jnp.dtype(matmul_dtype)

    def kernel(x_ref, adj_ref, w_ref, b_ref, xp_ref, ap_ref, stats_ref, h_ref):
        bias = b_ref[...]  # (1, H+K) f32

        # One wide feature matmul for the whole per-step block: (BB*N, F) @ (F, H+K).
        h_ref[...] = jnp.dot(x_ref[...], w_ref[...], preferred_element_type=jnp.float32)

        # tiny iota bool masks (no N^2 f32 identity tensor)
        diag_mask = (lax.broadcasted_iota(jnp.int32, (N, N), 0) ==
                     lax.broadcasted_iota(jnp.int32, (N, N), 1))
        kdiag_mask = (lax.broadcasted_iota(jnp.int32, (K, K), 0) ==
                      lax.broadcasted_iota(jnp.int32, (K, K), 1))

        def process(b, carry):
            link_acc, ent_acc = carry

            # adj stays in its transfer dtype in VMEM; MXU operands use mxu_dtype
            # (bf16 fast path / f32 exact path). No N^2 f32 upcast copy.
            adj = adj_ref[b].astype(mxu_dtype)  # (N, N)

            rowsum = jnp.sum(adj, axis=-1, keepdims=True, dtype=jnp.float32)
            diag = jnp.sum(jnp.where(diag_mask, adj, jnp.zeros_like(adj)),
                           axis=-1, keepdims=True, dtype=jnp.float32)
            deg = jnp.maximum(rowsum - diag + 1.0, 1.0)  # row degree of A_loop
            dinv = lax.rsqrt(deg)                        # (N, 1) f32

            row0 = b * N
            if N % 8 == 0 and not isinstance(b, int):
                row0 = pl.multiple_of(row0, 8)
            h = h_ref[pl.ds(row0, N), :]                 # (N, H+K) f32

            # A_norm @ h without materializing A_loop / A_norm:
            #   D^-1/2 (A u + (1 - diag) u) + bias, with u = D^-1/2 h.
            u = dinv * h
            v = jnp.dot(adj, u.astype(mxu_dtype), preferred_element_type=jnp.float32)
            v = v + (1.0 - diag) * u
            z = dinv * v + bias                          # (N, H+K) f32

            x_out = jnp.maximum(z[:, :H], 0.0)           # ReLU'd GCN branch (N, H)
            logits = z[:, H:]                            # pool branch        (N, K)

            # softmax applied twice (forward() + dense_diff_pool)
            e = jnp.exp(logits - jnp.max(logits, axis=-1, keepdims=True))
            s1 = e * pl.reciprocal(jnp.sum(e, axis=-1, keepdims=True), approx=approx_recip)
            e2 = jnp.exp(s1)  # s1 in [0, 1] -> second softmax skips the max-shift
            s = e2 * pl.reciprocal(jnp.sum(e2, axis=-1, keepdims=True), approx=False)

            st = s.T                                     # single explicit transpose (f32)
            s_m = s.astype(mxu_dtype)
            st_m = st.astype(mxu_dtype)

            xp = jnp.dot(st_m, x_out.astype(mxu_dtype),
                         preferred_element_type=jnp.float32)            # (K, H)
            tmp = jnp.dot(st_m, adj, preferred_element_type=jnp.float32)  # (K, N) = S^T A
            ap = jnp.dot(tmp.astype(mxu_dtype), s_m,
                         preferred_element_type=jnp.float32)            # (K, K) = S^T A S
            gram = jnp.dot(st_m, s_m, preferred_element_type=jnp.float32)  # (K, K) = S^T S

            # ||adj - S S^T||_F^2 = sum(adj^2) - 2 tr(S^T A S) + ||S^T S||_F^2
            if assume_binary_adj:
                adj_sq = jnp.sum(rowsum)  # adj^2 == adj for 0/1 adjacency
            else:
                adj32 = adj.astype(jnp.float32)
                adj_sq = jnp.sum(adj32 * adj32)
            tr = jnp.sum(jnp.where(kdiag_mask, ap, jnp.zeros_like(ap)))
            gram_sq = jnp.sum(gram * gram)
            link_sq = adj_sq - 2.0 * tr + gram_sq
            ent = jnp.sum(-s * jnp.log(s + EPS))

            xp_ref[b] = xp.astype(xp_ref.dtype)
            ap_ref[b] = ap.astype(ap_ref.dtype)
            return (link_acc + link_sq, ent_acc + ent)

        init = (jnp.zeros((1, 1), jnp.float32), jnp.zeros((1, 1), jnp.float32))
        if block_b <= 2:
            # static unroll only for tiny blocks
            carry = init
            for b in range(block_b):
                carry = process(b, carry)
        else:
            # fori_loop bounds the live working set to one batch element
            carry = lax.fori_loop(0, block_b, process, init)
        link_acc, ent_acc = carry
        # one packed lane-dense store per grid step
        stats_ref[0] = jnp.concatenate([link_acc, ent_acc], axis=1)

    return kernel


def diffpool_layer(x, adj, w_gcn, b_gcn, w_pool, b_pool, *,
                   block_b=None,
                   adj_transfer_dtype=jnp.bfloat16,
                   matmul_dtype=jnp.bfloat16,
                   assume_binary_adj=True):
    """DiffPoolLayer.forward (mask=None path).

    adj_transfer_dtype: HBM->VMEM dtype for adj. bf16 (default) and int8 are lossless
        for 0/1 adjacency; pass jnp.float32 (and assume_binary_adj=False) for weighted
        graphs.
    matmul_dtype: MXU operand dtype. bf16 (default, f32 accumulate) is the fast path;
        jnp.float32 reproduces the f32 reference numerics.
    """
    B, N, F = x.shape
    H = w_gcn.shape[1]
    K = w_pool.shape[1]
    HK = H + K

    # Fuse the two GCN branches: one propagation of width H+K instead of two adj matmuls.
    w_cat = jnp.concatenate([w_gcn, w_pool], axis=1).astype(jnp.float32)
    b_cat = jnp.concatenate([b_gcn.reshape(1, -1), b_pool.reshape(1, -1)],
                            axis=1).astype(jnp.float32)

    adj_in = adj.astype(adj_transfer_dtype)
    x_in = x.astype(jnp.float32).reshape(B * N, F)  # rows for the fused x@W matmul

    vmem_limit, vmem_budget, multi_core = _vmem_limits()
    adj_item = jnp.dtype(adj_transfer_dtype).itemsize
    copy_item = (0 if jnp.dtype(adj_transfer_dtype) == jnp.dtype(matmul_dtype)
                 else jnp.dtype(matmul_dtype).itemsize)
    if block_b is None:
        block_b = _choose_block_b(B, N, F, H, K, adj_item, copy_item,
                                  vmem_budget, multi_core)
    assert B % block_b == 0
    grid_b = B // block_b

    kernel = _build_kernel(
        N, H, K, block_b, matmul_dtype, assume_binary_adj,
        approx_recip=(jnp.dtype(matmul_dtype) == jnp.dtype(jnp.bfloat16)))

    out_shapes = (
        jax.ShapeDtypeStruct((B, K, H), jnp.float32),       # x_pooled
        jax.ShapeDtypeStruct((B, K, K), jnp.float32),       # adj_pooled
        jax.ShapeDtypeStruct((grid_b, 1, 2), jnp.float32),  # per-step [link_sq, ent-sum]
    )

    grid_spec = pltpu.PrefetchScalarGridSpec(
        num_scalar_prefetch=0,
        grid=(grid_b,),
        in_specs=[
            pl.BlockSpec((block_b * N, F), lambda b: (b, 0)),
            pl.BlockSpec((block_b, N, N), lambda b: (b, 0, 0)),
            pl.BlockSpec((F, HK), lambda b: (0, 0)),
            pl.BlockSpec((1, HK), lambda b: (0, 0)),
        ],
        out_specs=[
            pl.BlockSpec((block_b, K, H), lambda b: (b, 0, 0)),
            pl.BlockSpec((block_b, K, K), lambda b: (b, 0, 0)),
            pl.BlockSpec((1, 1, 2), lambda b: (b, 0, 0)),
        ],
        scratch_shapes=[pltpu.VMEM((block_b * N, HK), jnp.float32)],
    )

    x_pooled, adj_pooled, stats = pl.pallas_call(
        kernel,
        out_shape=out_shapes,
        grid_spec=grid_spec,
        compiler_params=pltpu.CompilerParams(
            dimension_semantics=("parallel",),
            vmem_limit_bytes=int(vmem_limit)),
    )(x_in, adj_in, w_cat, b_cat)

    # scalar glue (torch.norm over the whole tensor + mean over B*N rows);
    # max(., 0) guards f32 cancellation in sum(A^2) - 2 tr + ||S^T S||^2.
    link_total = jnp.maximum(jnp.sum(stats[:, 0, 0]), 0.0)
    link_loss = jnp.sqrt(link_total) / (B * N * N)
    ent_loss = jnp.sum(stats[:, 0, 1]) / (B * N)
    return x_pooled, adj_pooled, link_loss + ent_loss


# ----------------- pure-JAX reference (for verification) -----------------
def _reference(x, adj, w_gcn, b_gcn, w_pool, b_pool):
    B, N, F = x.shape
    eye = jnp.eye(N, dtype=x.dtype)
    adj_loop = jnp.where(eye[None] > 0, 1.0, adj)
    deg = jnp.maximum(adj_loop.sum(-1), 1.0)
    dinv = deg ** -0.5
    adj_n = dinv[:, :, None] * adj_loop * dinv[:, None, :]

    def gcn(w, b):
        return jnp.einsum('bnm,bmf->bnf', adj_n, x @ w) + b

    x_out = jax.nn.relu(gcn(w_gcn, b_gcn))
    s = jax.nn.softmax(gcn(w_pool, b_pool), axis=-1)
    s = jax.nn.softmax(s, axis=-1)
    xp = jnp.einsum('bnk,bnh->bkh', s, x_out)
    ap = jnp.einsum('bnk,bnm,bml->bkl', s, adj, s)
    diff = adj - jnp.einsum('bnk,bmk->bnm', s, s)
    link_loss = jnp.sqrt(jnp.sum(diff * diff)) / adj.size
    ent_loss = jnp.mean(jnp.sum(-s * jnp.log(s + EPS), axis=-1))
    return xp, ap, link_loss + ent_loss


if __name__ == "__main__":
    key = jax.random.PRNGKey(0)
    B, N = 2, 16            # batch, num nodes
    F_IN, H, K = 8, 32, 8   # dim_input, dim_hidden, dim_embed (clusters)

    k1, k2, k3, k4, k5, k6 = jax.random.split(key, 6)
    x = jax.random.normal(k1, (B, N, F_IN), dtype=jnp.float32)
    # symmetric 0/1 adjacency, zero diagonal
    a = (jax.random.uniform(k2, (B, N, N)) > 0.6).astype(jnp.float32)
    adj = jnp.clip(a + jnp.swapaxes(a, 1, 2), 0.0, 1.0)
    adj = adj * (1.0 - jnp.eye(N, dtype=jnp.float32)[None])

    # deterministic parameter init (DenseGCNConv: Linear(in, out, bias=False) + bias)
    w_gcn = 0.1 * jax.random.normal(k3, (F_IN, H), dtype=jnp.float32)
    b_gcn = 0.1 * jax.random.normal(k4, (1, H), dtype=jnp.float32)
    w_pool = 0.1 * jax.random.normal(k5, (F_IN, K), dtype=jnp.float32)
    b_pool = 0.1 * jax.random.normal(k6, (1, K), dtype=jnp.float32)

    xp_r, ap_r, loss_r = _reference(x, adj, w_gcn, b_gcn, w_pool, b_pool)

    # exact path (f32 MXU operands): reference-tight numerics
    xp, ap, loss = diffpool_layer(x, adj, w_gcn, b_gcn, w_pool, b_pool,
                                  matmul_dtype=jnp.float32)
    jax.block_until_ready((xp, ap, loss))
    assert jnp.allclose(xp, xp_r, atol=1e-4, rtol=1e-4)
    assert jnp.allclose(ap, ap_r, atol=1e-4, rtol=1e-4)
    assert jnp.allclose(loss, loss_r, atol=1e-5, rtol=1e-5)

    # default fast path (bf16 adj + bf16 MXU operands, f32 accumulate)
    xp_b, ap_b, loss_b = diffpool_layer(x, adj, w_gcn, b_gcn, w_pool, b_pool)
    jax.block_until_ready((xp_b, ap_b, loss_b))
    assert jnp.allclose(xp_b, xp_r, atol=3e-2, rtol=3e-2)
    assert jnp.allclose(ap_b, ap_r, atol=3e-2, rtol=3e-2)
    assert jnp.allclose(loss_b, loss_r, atol=1e-2, rtol=1e-2)

    print("KERNEL_OK")
</pallas_src>

<mosaic_0001>
module attributes {stable_mosaic.version = 11 : i64} {
  func.func @kernel(%arg0: i32, %arg1: memref<16x8xf32, #tpu.memory_space<vmem>>, %arg2: memref<1x16x16xbf16, #tpu.memory_space<vmem>>, %arg3: memref<8x40xf32, #tpu.memory_space<vmem>>, %arg4: memref<1x40xf32, #tpu.memory_space<vmem>>, %arg5: memref<1x8x32xf32, #tpu.memory_space<vmem>>, %arg6: memref<1x8x8xf32, #tpu.memory_space<vmem>>, %arg7: memref<1x1x2xf32, #tpu.memory_space<vmem>>, %arg8: memref<16x40xf32, #tpu.memory_space<vmem>>) attributes {dimension_semantics = [#tpu.dimension_semantics<parallel>], iteration_bounds = array<i64: 2>, scalar_prefetch = 0 : i64, scratch_operands = 1 : i64, tpu.core_type = #tpu.core_type<tc>, window_params = [{transform_indices = @transform_0, window_bounds = array<i64: 16, 8>}, {transform_indices = @transform_1, window_bounds = array<i64: 1, 16, 16>}, {pipeline_mode = #tpu.pipeline_mode<synchronous>, transform_indices = @transform_2, window_bounds = array<i64: 8, 40>}, {pipeline_mode = #tpu.pipeline_mode<synchronous>, transform_indices = @transform_3, window_bounds = array<i64: 1, 40>}, {transform_indices = @transform_4, window_bounds = array<i64: 1, 8, 32>}, {transform_indices = @transform_5, window_bounds = array<i64: 1, 8, 8>}, {transform_indices = @transform_6, window_bounds = array<i64: 1, 1, 2>}]} {
    %c0 = arith.constant 0 : index
    %c0_0 = arith.constant 0 : index
    %0 = vector.load %arg4[%c0, %c0_0] : memref<1x40xf32, #tpu.memory_space<vmem>>, vector<1x40xf32>
    %c0_1 = arith.constant 0 : index
    %c0_2 = arith.constant 0 : index
    %1 = vector.load %arg1[%c0_1, %c0_2] : memref<16x8xf32, #tpu.memory_space<vmem>>, vector<16x8xf32>
    %c0_3 = arith.constant 0 : index
    %c0_4 = arith.constant 0 : index
    %2 = vector.load %arg3[%c0_3, %c0_4] : memref<8x40xf32, #tpu.memory_space<vmem>>, vector<8x40xf32>
    %cst = arith.constant dense<0.000000e+00> : vector<16x40xf32>
    %3 = tpu.matmul %1, %2, %cst {dimension_numbers = #tpu.dot_dimension_numbers<[1], [0], [0], [1], [0, 0, 1, 1], [], []>} : vector<16x8xf32>, vector<8x40xf32>, vector<16x40xf32> -> vector<16x40xf32>
    %c0_5 = arith.constant 0 : index
    %c0_6 = arith.constant 0 : index
    %4 = vector.load %arg8[%c0_5, %c0_6] : memref<16x40xf32, #tpu.memory_space<vmem>>, vector<16x40xf32>
    tpu.vector_store %arg8[%c0_5, %c0_6], %3 {strides = array<i32>} : memref<16x40xf32, #tpu.memory_space<vmem>>, vector<16x40xf32>,
    %5 = tpu.iota {dimensions = array<i32: 0>} : vector<16x16xi32>
    %6 = tpu.iota {dimensions = array<i32: 1>} : vector<16x16xi32>
    %7 = arith.cmpi eq, %5, %6 : vector<16x16xi32>
    %8 = tpu.iota {dimensions = array<i32: 0>} : vector<8x8xi32>
    %9 = tpu.iota {dimensions = array<i32: 1>} : vector<8x8xi32>
    %10 = arith.cmpi eq, %8, %9 : vector<8x8xi32>
    %cst_7 = arith.constant 0.000000e+00 : f32
    %11 = vector.broadcast %cst_7 : f32 to vector<1x1xf32>
    %cst_8 = arith.constant 0.000000e+00 : f32
    %12 = vector.broadcast %cst_8 : f32 to vector<1x1xf32>
    %c0_9 = arith.constant 0 : index
    %c0_10 = arith.constant 0 : index
    %c0_11 = arith.constant 0 : index
    %13 = vector.load %arg2[%c0_9, %c0_10, %c0_11] : memref<1x16x16xbf16, #tpu.memory_space<vmem>>, vector<1x16x16xbf16>
    %14 = vector.shape_cast %13 : vector<1x16x16xbf16> to vector<16x16xbf16>
    %15 = arith.extf %14 : vector<16x16xbf16> to vector<16x16xf32>
    %cst_12 = arith.constant dense<0.000000e+00> : vector<16xf32>
    %16 = vector.multi_reduction <add>, %15, %cst_12 [1] : vector<16x16xf32> to vector<16xf32>
    %17 = vector.shape_cast %16 : vector<16xf32> to vector<16x1xf32>
    %cst_13 = arith.constant 0.000000e+00 : f32
    %18 = vector.broadcast %cst_13 : f32 to vector<16x16xf32>
    %19 = arith.select %7, %15, %18 : vector<16x16xi1>, vector<16x16xf32>
    %cst_14 = arith.constant dense<0.000000e+00> : vector<16xf32>
    %20 = vector.multi_reduction <add>, %19, %cst_14 [1] : vector<16x16xf32> to vector<16xf32>
    %21 = vector.shape_cast %20 : vector<16xf32> to vector<16x1xf32>
    %22 = arith.subf %17, %21 : vector<16x1xf32>
    %cst_15 = arith.constant 1.000000e+00 : f32
    %23 = vector.broadcast %cst_15 : f32 to vector<16x1xf32>
    %24 = arith.addf %22, %23 : vector<16x1xf32>
    %cst_16 = arith.constant 1.000000e+00 : f32
    %25 = vector.broadcast %cst_16 : f32 to vector<16x1xf32>
    %26 = arith.maximumf %24, %25 : vector<16x1xf32>
    %27 = math.rsqrt %26 : vector<16x1xf32>
    %c0_17 = arith.constant 0 : index
    %c0_18 = arith.constant 0 : index
    %28 = vector.load %arg8[%c0_17, %c0_18] : memref<16x40xf32, #tpu.memory_space<vmem>>, vector<16x40xf32>
    %29 = vector.broadcast %27 : vector<16x1xf32> to vector<16x40xf32>
    %30 = arith.mulf %29, %28 : vector<16x40xf32>
    %cst_19 = arith.constant dense<0.000000e+00> : vector<16x40xf32>
    %31 = tpu.matmul %15, %30, %cst_19 {dimension_numbers = #tpu.dot_dimension_numbers<[1], [0], [0], [1], [0, 0, 1, 1], [], []>} : vector<16x16xf32>, vector<16x40xf32>, vector<16x40xf32> -> vector<16x40xf32>
    %cst_20 = arith.constant 1.000000e+00 : f32
    %32 = vector.broadcast %cst_20 : f32 to vector<16x1xf32>
    %33 = arith.subf %32, %21 : vector<16x1xf32>
    %34 = vector.broadcast %33 : vector<16x1xf32> to vector<16x40xf32>
    %35 = arith.mulf %34, %30 : vector<16x40xf32>
    %36 = arith.addf %31, %35 : vector<16x40xf32>
    %37 = vector.broadcast %27 : vector<16x1xf32> to vector<16x40xf32>
    %38 = arith.mulf %37, %36 : vector<16x40xf32>
    %39 = vector.broadcast %0 : vector<1x40xf32> to vector<16x40xf32>
    %40 = arith.addf %38, %39 : vector<16x40xf32>
    %41 = vector.extract_strided_slice %40 {offsets = [0, 0], sizes = [16, 32], strides = [1, 1]} : vector<16x40xf32> to vector<16x32xf32>
    %cst_21 = arith.constant 0.000000e+00 : f32
    %42 = vector.broadcast %cst_21 : f32 to vector<16x32xf32>
    %43 = arith.maximumf %41, %42 : vector<16x32xf32>
    %44 = vector.extract_strided_slice %40 {offsets = [0, 32], sizes = [16, 8], strides = [1, 1]} : vector<16x40xf32> to vector<16x8xf32>
    %cst_22 = arith.constant dense<0xFF800000> : vector<16xf32>
    %45 = vector.multi_reduction <maximumf>, %44, %cst_22 [1] : vector<16x8xf32> to vector<16xf32>
    %46 = vector.shape_cast %45 : vector<16xf32> to vector<16x1xf32>
    %47 = vector.broadcast %46 : vector<16x1xf32> to vector<16x8xf32>
    %48 = arith.subf %44, %47 : vector<16x8xf32>
    %49 = math.exp %48 : vector<16x8xf32>
    %cst_23 = arith.constant dense<0.000000e+00> : vector<16xf32>
    %50 = vector.multi_reduction <add>, %49, %cst_23 [1] : vector<16x8xf32> to vector<16xf32>
    %51 = vector.shape_cast %50 : vector<16xf32> to vector<16x1xf32>
    %52 = tpu.reciprocal %51 : vector<16x1xf32> -> vector<16x1xf32>
    %53 = vector.broadcast %52 : vector<16x1xf32> to vector<16x8xf32>
    %54 = arith.mulf %49, %53 : vector<16x8xf32>
    %55 = math.exp %54 : vector<16x8xf32>
    %cst_24 = arith.constant dense<0.000000e+00> : vector<16xf32>
    %56 = vector.multi_reduction <add>, %55, %cst_24 [1] : vector<16x8xf32> to vector<16xf32>
    %57 = vector.shape_cast %56 : vector<16xf32> to vector<16x1xf32>
    %58 = tpu.reciprocal %57 : vector<16x1xf32> -> vector<16x1xf32>
    %59 = vector.broadcast %58 : vector<16x1xf32> to vector<16x8xf32>
    %60 = arith.mulf %55, %59 : vector<16x8xf32>
    %61 = tpu.transpose %60, [1, 0] : vector<16x8xf32> -> vector<8x16xf32>
    %cst_25 = arith.constant dense<0.000000e+00> : vector<8x32xf32>
    %62 = tpu.matmul %61, %43, %cst_25 {dimension_numbers = #tpu.dot_dimension_numbers<[1], [0], [0], [1], [0, 0, 1, 1], [], []>} : vector<8x16xf32>, vector<16x32xf32>, vector<8x32xf32> -> vector<8x32xf32>
    %cst_26 = arith.constant dense<0.000000e+00> : vector<8x16xf32>
    %63 = tpu.matmul %61, %15, %cst_26 {dimension_numbers = #tpu.dot_dimension_numbers<[1], [0], [0], [1], [0, 0, 1, 1], [], []>} : vector<8x16xf32>, vector<16x16xf32>, vector<8x16xf32> -> vector<8x16xf32>
    %cst_27 = arith.constant dense<0.000000e+00> : vector<8x8xf32>
    %64 = tpu.matmul %63, %60, %cst_27 {dimension_numbers = #tpu.dot_dimension_numbers<[1], [0], [0], [1], [0, 0, 1, 1], [], []>} : vector<8x16xf32>, vector<16x8xf32>, vector<8x8xf32> -> vector<8x8xf32>
    %cst_28 = arith.constant dense<0.000000e+00> : vector<8x8xf32>
    %65 = tpu.matmul %61, %60, %cst_28 {dimension_numbers = #tpu.dot_dimension_numbers<[1], [0], [0], [1], [0, 0, 1, 1], [], []>} : vector<8x16xf32>, vector<16x8xf32>, vector<8x8xf32> -> vector<8x8xf32>
    %66 = vector.shape_cast %17 : vector<16x1xf32> to vector<1x16x1xf32>
    %cst_29 = arith.constant dense<0.000000e+00> : vector<1xf32>
    %67 = vector.multi_reduction <add>, %66, %cst_29 [1, 2] : vector<1x16x1xf32> to vector<1xf32>
    %68 = vector.shape_cast %67 : vector<1xf32> to vector<1x1x1xf32>
    %69 = vector.extract %68[0, 0, 0] : f32 from vector<1x1x1xf32>
    %cst_30 = arith.constant 0.000000e+00 : f32
    %70 = vector.broadcast %cst_30 : f32 to vector<8x8xf32>
    %71 = arith.select %10, %64, %70 : vector<8x8xi1>, vector<8x8xf32>
    %72 = vector.shape_cast %71 : vector<8x8xf32> to vector<1x8x8xf32>
    %cst_31 = arith.constant dense<0.000000e+00> : vector<1xf32>
    %73 = vector.multi_reduction <add>, %72, %cst_31 [1, 2] : vector<1x8x8xf32> to vector<1xf32>
    %74 = vector.shape_cast %73 : vector<1xf32> to vector<1x1x1xf32>
    %75 = vector.extract %74[0, 0, 0] : f32 from vector<1x1x1xf32>
    %76 = arith.mulf %65, %65 : vector<8x8xf32>
    %77 = vector.shape_cast %76 : vector<8x8xf32> to vector<1x8x8xf32>
    %cst_32 = arith.constant dense<0.000000e+00> : vector<1xf32>
    %78 = vector.multi_reduction <add>, %77, %cst_32 [1, 2] : vector<1x8x8xf32> to vector<1xf32>
    %79 = vector.shape_cast %78 : vector<1xf32> to vector<1x1x1xf32>
    %80 = vector.extract %79[0, 0, 0] : f32 from vector<1x1x1xf32>
    %cst_33 = arith.constant 2.000000e+00 : f32
    %81 = arith.mulf %cst_33, %75 : f32
    %82 = arith.subf %69, %81 : f32
    %83 = arith.addf %82, %80 : f32
    %cst_34 = arith.constant 0.000000e+00 : f32
    %84 = vector.broadcast %cst_34 : f32 to vector<16x8xf32>
    %85 = arith.subf %84, %60 : vector<16x8xf32>
    %cst_35 = arith.constant 1.000000e-15 : f32
    %86 = vector.broadcast %cst_35 : f32 to vector<16x8xf32>
    %87 = arith.addf %60, %86 : vector<16x8xf32>
    %88 = math.log %87 : vector<16x8xf32>
    %89 = arith.mulf %85, %88 : vector<16x8xf32>
    %90 = vector.shape_cast %89 : vector<16x8xf32> to vector<1x16x8xf32>
    %cst_36 = arith.constant dense<0.000000e+00> : vector<1xf32>
    %91 = vector.multi_reduction <add>, %90, %cst_36 [1, 2] : vector<1x16x8xf32> to vector<1xf32>
    %92 = vector.shape_cast %91 : vector<1xf32> to vector<1x1x1xf32>
    %93 = vector.extract %92[0, 0, 0] : f32 from vector<1x1x1xf32>
    %c0_37 = arith.constant 0 : index
    %c0_38 = arith.constant 0 : index
    %c0_39 = arith.constant 0 : index
    %94 = vector.load %arg5[%c0_37, %c0_38, %c0_39] : memref<1x8x32xf32, #tpu.memory_space<vmem>>, vector<1x8x32xf32>
    %95 = vector.shape_cast %94 : vector<1x8x32xf32> to vector<8x32xf32>
    %96 = vector.shape_cast %62 : vector<8x32xf32> to vector<1x8x32xf32>
    tpu.vector_store %arg5[%c0_37, %c0_38, %c0_39], %96 {strides = array<i32>} : memref<1x8x32xf32, #tpu.memory_space<vmem>>, vector<1x8x32xf32>,
    %c0_40 = arith.constant 0 : index
    %c0_41 = arith.constant 0 : index
    %c0_42 = arith.constant 0 : index
    %97 = vector.load %arg6[%c0_40, %c0_41, %c0_42] : memref<1x8x8xf32, #tpu.memory_space<vmem>>, vector<1x8x8xf32>
    %98 = vector.shape_cast %97 : vector<1x8x8xf32> to vector<8x8xf32>
    %99 = vector.shape_cast %64 : vector<8x8xf32> to vector<1x8x8xf32>
    tpu.vector_store %arg6[%c0_40, %c0_41, %c0_42], %99 {strides = array<i32>} : memref<1x8x8xf32, #tpu.memory_space<vmem>>, vector<1x8x8xf32>,
    %100 = vector.broadcast %83 : f32 to vector<1x1xf32>
    %101 = arith.addf %11, %100 : vector<1x1xf32>
    %102 = vector.broadcast %93 : f32 to vector<1x1xf32>
    %103 = arith.addf %12, %102 : vector<1x1xf32>
    %104 = tpu.concatenate %101, %103 in 1 : vector<1x1xf32>, vector<1x1xf32> -> vector<1x2xf32>
    %c0_43 = arith.constant 0 : index
    %c0_44 = arith.constant 0 : index
    %c0_45 = arith.constant 0 : index
    %105 = vector.load %arg7[%c0_43, %c0_44, %c0_45] : memref<1x1x2xf32, #tpu.memory_space<vmem>>, vector<1x1x2xf32>
    %106 = vector.shape_cast %105 : vector<1x1x2xf32> to vector<1x2xf32>
    %107 = vector.shape_cast %104 : vector<1x2xf32> to vector<1x1x2xf32>
    tpu.vector_store %arg7[%c0_43, %c0_44, %c0_45], %107 {strides = array<i32>} : memref<1x1x2xf32, #tpu.memory_space<vmem>>, vector<1x1x2xf32>,
    return
  }
  func.func @transform_0(%arg0: i32) -> (i32, i32) {
    %c0_i32 = arith.constant 0 : i32
    %c0_i32_0 = arith.constant 0 : i32
    return %arg0, %c0_i32 : i32, i32
  }
  func.func @transform_1(%arg0: i32) -> (i32, i32, i32) {
    %c0_i32 = arith.constant 0 : i32
    %c0_i32_0 = arith.constant 0 : i32
    %c0_i32_1 = arith.constant 0 : i32
    return %arg0, %c0_i32, %c0_i32_0 : i32, i32, i32
  }
  func.func @transform_2(%arg0: i32) -> (i32, i32) {
    %c0_i32 = arith.constant 0 : i32
    %c0_i32_0 = arith.constant 0 : i32
    %c0_i32_1 = arith.constant 0 : i32
    return %c0_i32, %c0_i32_0 : i32, i32
  }
  func.func @transform_3(%arg0: i32) -> (i32, i32) {
    %c0_i32 = arith.constant 0 : i32
    %c0_i32_0 = arith.constant 0 : i32
    %c0_i32_1 = arith.constant 0 : i32
    return %c0_i32, %c0_i32_0 : i32, i32
  }
  func.func @transform_4(%arg0: i32) -> (i32, i32, i32) {
    %c0_i32 = arith.constant 0 : i32
    %c0_i32_0 = arith.constant 0 : i32
    %c0_i32_1 = arith.constant 0 : i32
    return %arg0, %c0_i32, %c0_i32_0 : i32, i32, i32
  }
  func.func @transform_5(%arg0: i32) -> (i32, i32, i32) {
    %c0_i32 = arith.constant 0 : i32
    %c0_i32_0 = arith.constant 0 : i32
    %c0_i32_1 = arith.constant 0 : i32
    return %arg0, %c0_i32, %c0_i32_0 : i32, i32, i32
  }
  func.func @transform_6(%arg0: i32) -> (i32, i32, i32) {
    %c0_i32 = arith.constant 0 : i32
    %c0_i32_0 = arith.constant 0 : i32
    %c0_i32_1 = arith.constant 0 : i32
    return %arg0, %c0_i32, %c0_i32_0 : i32, i32, i32
  }
}

</mosaic_0001>

<bundles_post_ra>
// kernel: tpu_custom_call.1
= control target key start
LH: loop header
LB: loop body
LE: loop exit
PB: predicated region body
PF: predicated region fallthrough
CT: control target
= control target key end

     0   :  { %s1703_s0 = inlined_call_operand.vmem [shape: f32[32,8], index: 0, kind: input, shape index: {}]   ;;  %s1704_s1 = inlined_call_operand.vmem [shape: bf16[2,16,16], index: 1, kind: input, shape index: {}]   ;;  %s1705_s2 = inlined_call_operand.vmem [shape: f32[8,40], index: 2, kind: input, shape index: {}]   ;;  %s1706_s3 = inlined_call_operand.vmem [shape: f32[1,40], index: 3, kind: input, shape index: {}]   ;;  %s1707_s4 = inlined_call_operand.hbm [shape: f32[2,8,32], index: 4, kind: output, shape index: {0}]   ;;  %s1708_s5 = inlined_call_operand.hbm [shape: f32[2,8,8], index: 5, kind: output, shape index: {1}]   ;;  %s1709_s6 = inlined_call_operand.hbm [shape: f32[2,1,2], index: 6, kind: output, shape index: {2}]  }
   0x1   :  { %1711 = sst [smem:[#allocation10_spill]] %s1703_s0 }
   0x2   :  { %12 = vsyncpa [#allocation4], 0 }
   0x3   :  { %14 = vsyncpa [#allocation4 + $0x1], 0 }
   0x4   :  { %15 = vsyncpa [#allocation6], 0 }
   0x5   :  { %17 = vsyncpa [#allocation6 + $0x1], 0  ;;  %s1480_s21 = smov 0   ;;  %s1482_s22 = smov 0  }
   0x6   :  { %s1484_s23 = smov 0   ;;  %s1486_s24 = smov 0  }
   0x7 LB: > { %s1501_s25 = sadd.s32 4294967295, %s1437_s24   ;;  %s1710_s26 = sadd.s32 4294967294, %s1437_s24   ;;  %s1437_s24 = sphi %s1486_s24, %s1719_s24   ;;  %s1433_s23 = sphi %s1484_s23, %s1718_s23   ;;  %s1429_s22 = sphi %s1482_s22, %s1717_s22   ;;  %s1425_s21 = sphi %s1480_s21, %s1716_s21  }
   0x8   : > { %s1505_s27 = sadd.s32 1, %s1437_s24   ;;  %s124_s28 = sadd.s32 1, %s1433_s23 }
   0x9   : > { %s121_s29 = ssub.s32 %s1437_s24, %s1505_s27  ;;  %p134_p0 = scmp.ne.s32.totalorder %s1433_s23, %s1429_s22 }
   0xa   : > { %p122_p1 = scmp.eq.s32.totalorder %s121_s29, 0  ;;  %p135_p2 = scmp.eq.s32.totalorder %s1501_s25, 1 }
   0xb   : > { %p140_p3 = scmp.ne.s32.totalorder %s1429_s22, %s1425_s21  ;;  %p141_p4 = scmp.eq.s32.totalorder %s1710_s26, 1 }
   0xc   : > { %s1518_s30 = scalar_select %p122_p1, %s1433_s23, %s124_s28  }
   0xd   : > { %p1520_p5 = por %p135_p2, %p134_p0  ;;  %p1524_p6 = por %p141_p4, %p140_p3 }
   0xe   : > { %p1150_p7 = scmp.ge.s32.totalorder %s1437_s24, 1  ;;  %p234_p8 = scmp.lt.s32.totalorder %s1437_s24, 3 }
  0x10   : > { %p235_p9 = pnand %p1150_p7, %p234_p8 }
  0x11   : > { %s1153_s11 = sshll.u32 (!%p235_p9), %s1501_s25, 1  ;;  %p284_p10 = scmp.lt.s32.totalorder (!%p235_p9), %s1501_s25, 1 }
  0x12   : > { %238 = sbr.rel (%p235_p9) target bundleno = 2000 (0x7d0), region = 36  ;;  %p279_p11 = scmp.lt.s32.totalorder (!%p235_p9), %s1153_s11, 3 }
  0x13   : > { %s1714_s0 = sld [smem:[#allocation10_spill]] (!%p235_p9)  ;;  %s1440_s9 = smov (!%p235_p9), 96  }
  0x14   : > { %s1603_s10 = sand.u32 (!%p235_p9), 1, %s1429_s22   ;;  %s1168_s15 = sshll.u32 (!%p235_p9), %s1501_s25, 7 }
  0x15   : > { %s1621_s18 = scalar_lea.hbm (!%p235_p9), %s1708_s5, %s1168_s15  ;;  %s1626_s29 = scalar_lea.hbm (!%p235_p9), %s1707_s4, %s1168_s15 }
  0x16   : > { %s1442_s26 = smov (!%p235_p9), [#allocation5]  }
  0x17   : > { %v292_v0 = vld [vmem:[%s1705_s2] sm:$0xff]  ;;  %v378_v1 = vlaneseq  ;;  %s285_s12 = scalar_select %p284_p10, %s1501_s25, 1  ;;  %vm293_vm0 = vcmask 64512   ;;  %vm389_vm1 = vcmask 130048   ;;  %vm892_vm4 = vcmask 7168  }
  0x18   : > { %1197 = vmatprep.subr.mxu0 %v292_v0  ;;  %s1721_s11 = smov (!%p279_p11, %s1153_s11), 3  ;;  %vm375_vm5 = vcmask 326656   ;;  %v1439_v37 = vmov 0.0   ;;  %v1161_v44 = vld [vmem:[%s1706_s3] ss:$0 sm:$0xff]  ;;  %vm513_vm6 = vcmask 326912  }
  0x19   : > { %1198 = vmatpush3.msra.mxu0 %v292_v0  ;;  %v1536_v2 = vshrl.u32 %v378_v1, 7  ;;  %v1538_v3 = vand.u32 127, %v378_v1  ;;  %s1173_s13 = sshll.u32 %s285_s12, 3  ;;  %s1154_s14 = sshll.u32 %s1721_s11, 3  ;;  %vm1441_vm7 = vmmov 0   ;;  %vm960_vm8 = vcmask 261120  }
  0x1a   : > { %s288_s17 = scalar_lea.vmem %s1704_s1, %s1173_s13  ;;  %s282_s20 = scalar_lea.vmem %s1714_s0, %s1154_s14  ;;  %1209 = vmatprep.subr.mxu0 %v1439_v37 }
  0x1b   : > { %v380_v4 = vadd.s32 8, %v1536_v2  ;;  %v1175_v5 = vld [vmem:[%s288_s17] sm:$0xff]   ;;  %vm383_vm3 = vcmp.eq.s32.totalorder %v1536_v2, %v1538_v3  ;;  %v291_v7 = vld [vmem:[%s282_s20 + $0x8] sm:$0xff]  ;;  %s1151_s11 = sshll.u32 %s1603_s10, 3  ;;  %s975_s14 = sand.u32 1, %s1501_s25  }
  0x1c   : > { %v290_v6 = vld [vmem:[%s282_s20] sm:$0xff]  ;;  %v1177_v8 = vunpack.c.h.bf16 %v1175_v5  ;;  %v1176_v9 = vunpack.c.l.bf16 %v1175_v5  ;;  %s1606_s12 = scalar_lea.vmem [#allocation3], %s1151_s11  ;;  %s271_s13 = scalar_lea.vmem [#allocation5], %s1151_s11 }
  0x1d   : > { %vm384_vm2 = vcmp.eq.s32.totalorder %v380_v4, %v1538_v3  ;;  %1199 = vmatprep.mubr.msk.f32.mxu0 %vm293_vm0, %v290_v6  ;;  %s1006_s19 = sshll.u32 %s271_s13, 4  ;;  %s1325_s0 = sshll.u32 %s1442_s26, 4  ;;  %s1007_s19 = int_to_ptr.vmem [resolvable:$true] %s1006_s19  ;;  %s1326_s0 = int_to_ptr.vmem [resolvable:$false] %s1325_s0 }
  0x1e   : > { %1200 = vmatmul.mubr.msk.f32.vlgmr.msra.gmra.mxu0 %vm293_vm0, %v291_v7  ;;  %v393_v10 = vsel %vm389_vm1, %v1177_v8, 0.0  ;;  %v390_v11 = vsel %vm389_vm1, %v1176_v9, 0.0  ;;  %v397_v12 = vsel %vm384_vm2, %v1177_v8, 0.0  ;;  %v396_v13 = vsel %vm383_vm3, %v1176_v9, 0.0  ;;  %1206 = vmatprep.mubr.msk.f32.mxu1 %vm389_vm1, %v1176_v9  ;;  %s1321_s11 = scalar_lea.vmem %s1007_s19, 128  ;;  %s1327_s16 = scalar_lea.vmem %s1326_s0, 256 }
  0x1f   : > { %394 = vadd.xlane.f32.xlu0 %v393_v10  ;;  %391 = vadd.xlane.f32.xlu1 %v390_v11  ;;  %v401_v14 = vsel %vm389_vm1, %v397_v12, 0.0  ;;  %v398_v15 = vsel %vm389_vm1, %v396_v13, 0.0  ;;  %p1322_p12 = scmp.ne.s32.totalorder %s1007_s19, %s1321_s11  ;;  %p1328_p1 = scmp.lt.s32.totalorder %s1007_s19, %s1326_s0 }
  0x20   : > { %1213 = vmatprep.mubr.msk.f32.mxu0 %vm1441_vm7, %v1439_v37  ;;  %p1329_p2 = scmp.lt.s32.totalorder %s1327_s16, %s1321_s11 }
  0x21   : > { %p1323_p13 = pnand %p1322_p12, %p1520_p5 }
  0x22   : > { %p1330_p3 = por %p1329_p2, %p1328_p1 }
  0x23   : > { %402 = vadd.xlane.f32.xlu0 %v401_v14  ;;  %399 = vadd.xlane.f32.xlu1 %v398_v15  ;;  %p1324_p0 = pneg %p1323_p13 }
  0x25   : > { %p1331_p4 = pnand %p1330_p3, %p1324_p0 }
  0xa8   : > { %v395_v16 = vpop.xlane.xlu0 %394  ;;  %v392_v17 = vpop.xlane.xlu1 %391 }
  0xa9   : > { %v894_v18 = vsel %vm892_vm4, %v395_v16, 0.0  ;;  %v893_v19 = vsel %vm892_vm4, %v392_v17, 0.0 }
  0xaa   : > { %v1562_v20 = vadd.f32 %v894_v18, %v893_v19 }
  0xac   : > { %v403_v21 = vpop.xlane.xlu0 %402  ;;  %v400_v22 = vpop.xlane.xlu1 %399 }
  0xad   : > { %v405_v23 = vsub.f32 %v395_v16, %v403_v21  ;;  %v404_v24 = vsub.f32 %v392_v17, %v400_v22  ;;  %v417_v38 = vsub.f32 1.0, %v403_v21  ;;  %v416_v39 = vsub.f32 1.0, %v400_v22 }
  0xaf   : > { %v407_v25 = vadd.f32 1.0, %v405_v23  ;;  %v406_v26 = vadd.f32 1.0, %v404_v24 }
  0xb1   : > { %v409_v27 = vmax.f32 %v407_v25, 1.0  ;;  %v408_v28 = vmax.f32 %v406_v26, 1.0 }
  0xb3   : > { %1297 = vrsqrt.f32 %v409_v27 }
  0xb4   : > { %1299 = vrsqrt.f32 %v408_v28 }
  0xc0   : > { %v1298_v31 = vpop.eup %1297 }
  0xc1   : > { %v1300_v34 = vpop.eup %1299 }
  0xde   : > { %v1201_v29 = vpop.f32.mrf.mxu0 }
  0xdf   : > { %377 = vst.msk [vmem:[#allocation2 + $0x8] sm:$0xff] %vm375_vm5, %v1201_v29 }
  0xe0   : > { %v366_v30 = vpop.f32.mrf.mxu0 }
  0xe1   : > { %376 = vst.msk [vmem:[#allocation2] sm:$0xff] %vm375_vm5, %v366_v30 }
  0xe6   : > { %v413_v32 = vld [vmem:[#allocation2 + $0x8] sm:$0xff] }
  0xe7   : > { %v415_v33 = vmul.f32 %v1298_v31, %v413_v32 }
  0xe8   : > { %v412_v35 = vld [vmem:[#allocation2] sm:$0xff] }
  0xe9   : > { %1202 = vmatprep.subr.mxu1 %v415_v33  ;;  %v414_v36 = vmul.f32 %v1300_v34, %v412_v35  ;;  %v419_v40 = vmul.f32 %v417_v38, %v415_v33 }
  0xea   : > { %1203 = vmatpush3.msra.mxu1 %v415_v33 }
  0xeb   : > { %1204 = vmatprep.subr.mxu1 %v414_v36  ;;  %v418_v43 = vmul.f32 %v416_v39, %v414_v36 }
  0xec   : > { %1205 = vmatpush3.msra.mxu1 %v414_v36 }
  0xed   : > { %1207 = vmatmul.mubr.msk.f32.vlgmr.msra.gmra.mxu1 %vm389_vm1, %v1177_v8  ;;  %1216 = vmatprep.subr.mxu1 %v1439_v37 }
  0xee   : > { %1217 = vmatpush3.msra.mxu1 %v1177_v8  ;;  %1220 = vmatprep.mubr.msk.f32.mxu1 %vm1441_vm7, %v1439_v37 }
  0xef   : > { %1218 = vmatprep.subr.mxu1 %v1439_v37 }
  0xf0   : > { %1219 = vmatpush3.msra.mxu1 %v1176_v9 }
  0xf1   : > { %1230 = vmatprep.subr.mxu1 %v1439_v37 }
 0x1ad   : > { %v1208_v41 = vpop.f32.mrf.mxu1 }
 0x1ae   : > { %v498_v42 = vadd.f32 %v1208_v41, %v419_v40 }
 0x1af   : > { %v492_v45 = vpop.f32.mrf.mxu1 }
 0x1b0   : > { %v502_v46 = vmul.f32 %v1298_v31, %v498_v42  ;;  %v493_v47 = vadd.f32 %v492_v45, %v418_v43 }
 0x1b2   : > { %v510_v48 = vadd.f32 %v1161_v44, %v502_v46  ;;  %v501_v49 = vmul.f32 %v1300_v34, %v493_v47 }
 0x1b4   : > { %v509_v50 = vadd.f32 %v1161_v44, %v501_v49  ;;  %v517_v51 = vsel %vm513_vm6, %v510_v48, -inf  ;;  %v512_v52 = vmax.f32 %v510_v48, 0.0 }
 0x1b5   : > { %518 = vmax.xlane.f32.xlu1 %v517_v51 }
 0x1b6   : > { %1210 = vmatpush3.msra.mxu0 %v512_v52  ;;  %v514_v53 = vsel %vm513_vm6, %v509_v50, -inf  ;;  %v511_v54 = vmax.f32 %v509_v50, 0.0 }
 0x1b7   : > { %1211 = vmatprep.subr.mxu0 %v1439_v37  ;;  %515 = vmax.xlane.f32.xlu0 %v514_v53 }
 0x1b8   : > { %1212 = vmatpush3.msra.mxu0 %v511_v54 }
 0x1b9   : > { %1223 = vmatprep.subr.mxu0 %v1439_v37 }
 0x23e   : > { %v519_v55 = vpop.xlane.xlu1 %518 }
 0x23f   : > { %v521_v56 = vsub.f32 %v510_v48, %v519_v55 }
 0x240   : > { %v516_v57 = vpop.xlane.xlu0 %515 }
 0x241   : > { %v524_v58 = vmul.f32 1.442695, %v521_v56  ;;  %v520_v59 = vsub.f32 %v509_v50, %v516_v57 }
 0x243   : > { %1301 = vpow2.f32 %v524_v58  ;;  %v522_v60 = vmul.f32 1.442695, %v520_v59 }
 0x245   : > { %1303 = vpow2.f32 %v522_v60 }
 0x250   : > { %v1302_v61 = vpop.eup %1301 }
 0x251   : > { %530 = vrot.lane.b32.xlu1 %v1302_v61, %s1440_s9 }
 0x252   : > { %v1304_v62 = vpop.eup %1303 }
 0x253   : > { %528 = vrot.lane.b32.xlu0 %v1304_v62, %s1440_s9 }
 0x2c3   : > { %v531_v63 = vpop.permute.xlu1 %530 }
 0x2c4   : > { %v537_v0 = vsel %vm293_vm0, %v531_v63, 0.0 }
 0x2c5   : > { %538 = vadd.xlane.f32.xlu0 %v537_v0  ;;  %v529_v1 = vpop.permute.xlu0 %528 }
 0x2c6   : > { %v534_v4 = vsel %vm293_vm0, %v529_v1, 0.0 }
 0x2c7   : > { %535 = vadd.xlane.f32.xlu1 %v534_v4 }
 0x34e   : > { %v539_v5 = vpop.xlane.xlu0 %538 }
 0x34f   : > { %1305 = vrcp.f32 %v539_v5 }
 0x350   : > { %v536_v6 = vpop.xlane.xlu1 %535 }
 0x351   : > { %1307 = vrcp.f32 %v536_v6 }
 0x35c   : > { %v1306_v7 = vpop.eup %1305 }
 0x35d   : > { %v543_v8 = vmul.f32 %v1306_v7, %v1302_v61 }
 0x35e   : > { %v1308_v9 = vpop.eup %1307 }
 0x35f   : > { %v546_v10 = vmul.f32 1.442695, %v543_v8  ;;  %v542_v11 = vmul.f32 %v1308_v9, %v1304_v62 }
 0x361   : > { %1309 = vpow2.f32 %v546_v10  ;;  %v544_v12 = vmul.f32 1.442695, %v542_v11 }
 0x363   : > { %1311 = vpow2.f32 %v544_v12 }
 0x36e   : > { %v1310_v13 = vpop.eup %1309 }
 0x36f   : > { %552 = vrot.lane.b32.xlu1 %v1310_v13, %s1440_s9 }
 0x370   : > { %v1312_v14 = vpop.eup %1311 }
 0x371   : > { %550 = vrot.lane.b32.xlu0 %v1312_v14, %s1440_s9 }
 0x3e1   : > { %v553_v15 = vpop.permute.xlu1 %552 }
 0x3e2   : > { %v559_v16 = vsel %vm293_vm0, %v553_v15, 0.0 }
 0x3e3   : > { %560 = vadd.xlane.f32.xlu0 %v559_v16  ;;  %v551_v17 = vpop.permute.xlu0 %550 }
 0x3e4   : > { %v556_v18 = vsel %vm293_vm0, %v551_v17, 0.0 }
 0x3e5   : > { %557 = vadd.xlane.f32.xlu1 %v556_v18 }
 0x46c   : > { %v561_v19 = vpop.xlane.xlu0 %560 }
 0x46d   : > { %1313 = vrcp.f32 %v561_v19 }
 0x46e   : > { %v558_v21 = vpop.xlane.xlu1 %557 }
 0x46f   : > { %1315 = vrcp.f32 %v558_v21 }
 0x47a   : > { %v1314_v22 = vpop.eup %1313 }
 0x47b   : > { %v565_v23 = vmul.f32 %v1314_v22, %v1310_v13 }
 0x47c   : > { %v1316_v24 = vpop.eup %1315 }
 0x47d   : > { %570 = vrot.lane.b32.xlu1 %v565_v23, %s1440_s9  ;;  %v933_v25 = vadd.f32 1e-15, %v565_v23  ;;  %v564_v26 = vmul.f32 %v1316_v24, %v1312_v14  ;;  %v931_v34 = vsub.f32 0.0, %v565_v23 }
 0x47f   : > { %568 = vrot.lane.b32.xlu0 %v564_v26, %s1440_s9  ;;  %v932_v27 = vadd.f32 1e-15, %v564_v26  ;;  %1317 = vlog2.f32 %v933_v25  ;;  %v930_v30 = vsub.f32 0.0, %v564_v26 }
 0x481   : > { %1319 = vlog2.f32 %v932_v27 }
 0x48c   : > { %v1318_v28 = vpop.eup %1317 }
 0x48d   : > { %v937_v33 = vmul.f32 0.6931472, %v1318_v28 }
 0x48e   : > { %v1320_v29 = vpop.eup %1319 }
 0x48f   : > { %v935_v31 = vmul.f32 0.6931472, %v1320_v29  ;;  %v939_v35 = vmul.f32 %v937_v33, %v931_v34 }
 0x491   : > { %v938_v32 = vmul.f32 %v935_v31, %v930_v30 }
 0x493   : > { %942 = vrot.lane.b32.xlu0 %v938_v32, %s1440_s9 }
 0x497   : > { %944 = vrot.lane.b32.xlu0 %v939_v35, %s1440_s9  ;;  %s1628_s9 = scalar_lea.sflag [#allocation6], %s975_s14 }
 0x4b6   : > { %896 = vadd.xlane.f32.xlu0 %v1562_v20 }
 0x4ef   : > { %v571_v38 = vpop.permute.xlu1 %570 }
 0x4f1   : > { %v569_v36 = vpop.permute.xlu0 %568 }
 0x4f2   : > { %574 = vxpose.xlu1.b32.start [1/2] (short) (narrow) %v569_v36, 8 }
 0x4f6   : > { %575 = vxpose.xlu1.b32.end [2/2] (short) (narrow) %v571_v38, 8 }
 0x505   : > { %v943_v39 = vpop.permute.xlu0 %942 }
 0x506   : > { %v948_v41 = vsel %vm293_vm0, %v943_v39, 0.0 }
 0x509   : > { %v945_v40 = vpop.permute.xlu0 %944 }
 0x50a   : > { %v949_v42 = vsel %vm293_vm0, %v945_v40, 0.0 }
 0x50b   : > { %v950_v43 = vadd.f32 %v949_v42, %v948_v41 }
 0x53f   : > { %v897_v44 = vpop.xlane.xlu0 %896 }
 0x540   : > { %v898_v20 = vrot.slane %v897_v44, 4 }
 0x542   : > { %v899_v45 = vadd.f32 %v898_v20, %v897_v44 }
 0x544   : > { %v900_v46 = vrot.slane %v899_v45, 2 }
 0x546   : > { %v901_v47 = vadd.f32 %v900_v46, %v899_v45 }
 0x548   : > { %v902_v48 = vrot.slane %v901_v47, 1 }
 0x54a   : > { %v903_v49 = vadd.f32 %v902_v48, %v901_v47 }
 0x54c   : > { %1237 = vpush %v903_v49 }
 0x56e   : > { %v590_v50 = vpop.trf.xlu1 }
 0x56f   : > { %1214 = vmatmul.mubr.msk.f32.vlgmr.msra.gmra.mxu0 %vm389_vm1, %v590_v50  ;;  %1221 = vmatmul.mubr.msk.f32.vlgmr.msra.gmra.mxu1 %vm389_vm1, %v590_v50 }
 0x570   : > { %1224 = vmatpush3.msra.mxu0 %v571_v38  ;;  %1231 = vmatpush3.msra.mxu1 %v571_v38 }
 0x571   : > { %1225 = vmatprep.subr.mxu0 %v1439_v37  ;;  %1232 = vmatprep.subr.mxu1 %v1439_v37 }
 0x572   : > { %1226 = vmatpush3.msra.mxu0 %v569_v36  ;;  %1233 = vmatpush3.msra.mxu1 %v569_v36 }
 0x573   : > { %1234 = vmatprep.mubr.msk.f32.mxu1 %vm1441_vm7, %v1439_v37  ;;  %1227 = vmatprep.mubr.msk.f32.mxu0 %vm1441_vm7, %v1439_v37 }
 0x574   : > { %1235 = vmatmul.mubr.msk.f32.vlgmr.msra.gmra.mxu1 %vm389_vm1, %v590_v50 }
 0x62f   : > { %v675_v51 = vpop.f32.mrf.mxu0  ;;  %v745_v52 = vpop.f32.mrf.mxu1 }
 0x630   : > { %961 = vst.msk [vmem:[%s1606_s12] sm:$0xff] %vm960_vm8, %v675_v51  ;;  %1228 = vmatmul.mubr.msk.f32.vlgmr.msra.gmra.mxu0 %vm389_vm1, %v745_v52 }
 0x631   : > { %v1215_v53 = vpop.f32.mrf.mxu0  ;;  %v1222_v54 = vpop.f32.mrf.mxu1 }
 0x634   : > { %v888_v37 = vpop.f32.mrf.mxu1 }
 0x635   : > { %v916_v55 = vmul.f32 %v888_v37, %v888_v37 }
 0x636   : > { %v1236_v56 = vpop.f32.mrf.mxu1 }
 0x637   : > { %v917_v57 = vsel %vm293_vm0, %v916_v55, 0.0 }
 0x638   : > { %918 = vadd.xlane.f32.xlu1 %v917_v57 }
 0x6f0   : > { %v818_v58 = vpop.f32.mrf.mxu0 }
 0x6f1   : > { %962 = vst.msk [vmem:[%s271_s13] sm:$0xff] %vm293_vm0, %v818_v58  ;;  %v905_v59 = vsel %vm383_vm3, %v818_v58, 0.0 }
 0x6f2   : > { %v1229_v60 = vpop.f32.mrf.mxu0  ;;  %v906_v61 = vsel %vm293_vm0, %v905_v59, 0.0 }
 0x6f3   : > { %907 = vadd.xlane.f32.xlu0 %v906_v61 }
 0x6f7   : > { %951 = vadd.xlane.f32.xlu0 %v950_v43 }
 0x6f8   : > { %1334 = shalt.err (!%p1331_p4)
}
 0x6f9   : > { %s1335_s13 = scalar_lea.hbm %s1621_s18, 128  ;;  %s1339_s26 = scalar_lea.hbm %s1708_s5, 256 }
 0x6fa   : > { %p1336_p7 = scmp.ne.s32.totalorder %s1621_s18, %s1335_s13  ;;  %p1340_p10 = scmp.lt.s32.totalorder %s1621_s18, %s1708_s5 }
 0x6fb   : > { %p1341_p11 = scmp.lt.s32.totalorder %s1339_s26, %s1335_s13 }
 0x6fc   : > { %p1337_p8 = pnand %p1336_p7, %p1520_p5 }
 0x6fd   : > { %p1342_p12 = por %p1341_p11, %p1340_p10 }
 0x6fe   : > { %p1338_p9 = pneg %p1337_p8 }
 0x700   : > { %p1343_p13 = pnand %p1342_p12, %p1338_p9 }
 0x702   : > { %1346 = shalt.err (!%p1343_p13)
}
 0x703   : > { %1246 = dma.vmem_to_hbm [thread:$0]  (%p1520_p5), %s1007_s19, 128, %s1621_s18, %s1628_s9  }
 0x704   : > { %s993_s0 = sshll.u32 %s1606_s12, 4  ;;  %s971_s28 = scalar_lea.sflag [#allocation4], %s1603_s10  ;;  %s994_s0 = int_to_ptr.vmem [resolvable:$true] %s993_s0 }
 0x705   : > { %s1347_s11 = scalar_lea.vmem %s994_s0, 128  ;;  %s1443_s16 = smov [#allocation3]  }
 0x706   : > { %p1348_p0 = scmp.ne.s32.totalorder %s994_s0, %s1347_s11  ;;  %s1351_s13 = sshll.u32 %s1443_s16, 4  ;;  %s1352_s13 = int_to_ptr.vmem [resolvable:$false] %s1351_s13 }
 0x707   : > { %s1353_s14 = scalar_lea.vmem %s1352_s13, 256  ;;  %p1354_p3 = scmp.lt.s32.totalorder %s994_s0, %s1352_s13 }
 0x708   : > { %p1349_p1 = pnand %p1348_p0, %p1520_p5  ;;  %p1355_p4 = scmp.lt.s32.totalorder %s1353_s14, %s1347_s11 }
 0x70a   : > { %p1350_p2 = pneg %p1349_p1  ;;  %p1356_p7 = por %p1355_p4, %p1354_p3 }
 0x70c   : > { %p1357_p8 = pnand %p1356_p7, %p1350_p2 }
 0x70e   : > { %1360 = shalt.err (!%p1357_p8)
}
 0x70f   : > { %s1361_s12 = scalar_lea.hbm %s1626_s29, 128  ;;  %s1365_s15 = scalar_lea.hbm %s1707_s4, 256 }
 0x710   : > { %p1362_p9 = scmp.ne.s32.totalorder %s1626_s29, %s1361_s12  ;;  %p1366_p12 = scmp.lt.s32.totalorder %s1626_s29, %s1707_s4 }
 0x711   : > { %p1367_p13 = scmp.lt.s32.totalorder %s1365_s15, %s1361_s12 }
 0x712   : > { %p1363_p10 = pnand %p1362_p9, %p1520_p5 }
 0x713   : > { %p1368_p0 = por %p1367_p13, %p1366_p12 }
 0x714   : > { %p1364_p11 = pneg %p1363_p10 }
 0x716   : > { %p1369_p1 = pnand %p1368_p0, %p1364_p11 }
 0x718   : > { %1372 = shalt.err (!%p1369_p1)
}
 0x719   : > { %1245 = dma.vmem_to_hbm [thread:$0]  (%p1520_p5), %s994_s0, 128, %s1626_s29, %s971_s28   ;;  %v919_v2 = vpop.xlane.xlu1 %918  ;;  %vm968_vm9 = vcmask 8192  }
 0x71a   : > { %v920_v3 = vrot.slane %v919_v2, 4  ;;  %s1238_s29 = spop %1237  ;;  %s1170_s28 = sshll.u32 %s1501_s25, 4 }
 0x71b   : > { %s277_s14 = scalar_lea.vmem [#allocation7], %s1603_s10  ;;  %s1017_s26 = scalar_lea.hbm %s1709_s6, %s1170_s28 }
 0x71c   : > { %v921_v62 = vadd.f32 %v920_v3, %v919_v2  ;;  %s1019_s12 = sshll.u32 %s277_s14, 4  ;;  %s1444_s25 = smov [#allocation7]   ;;  %s1020_s12 = int_to_ptr.vmem [resolvable:$true] %s1019_s12 }
 0x71d   : > { %s1373_s17 = scalar_lea.vmem %s1020_s12, 16  ;;  %s1377_s10 = sshll.u32 %s1444_s25, 4  ;;  %s1378_s10 = int_to_ptr.vmem [resolvable:$false] %s1377_s10 }
 0x71e   : > { %v922_v63 = vrot.slane %v921_v62, 2  ;;  %p1374_p2 = scmp.ne.s32.totalorder %s1020_s12, %s1373_s17  ;;  %p1380_p7 = scmp.lt.s32.totalorder %s1020_s12, %s1378_s10 }
 0x720   : > { %v923_v5 = vadd.f32 %v922_v63, %v921_v62  ;;  %p1375_p3 = pnand %p1374_p2, %p1520_p5 }
 0x722   : > { %v924_v11 = vrot.slane %v923_v5, 1  ;;  %p1376_p4 = pneg %p1375_p3 }
 0x724   : > { %v925_v16 = vadd.f32 %v924_v11, %v923_v5 }
 0x77c   : > { %v908_v0 = vpop.xlane.xlu0 %907 }
 0x77d   : > { %v909_v1 = vrot.slane %v908_v0, 4 }
 0x77f   : > { %v910_v4 = vadd.f32 %v909_v1, %v908_v0 }
 0x780   : > { %v952_v6 = vpop.xlane.xlu0 %951 }
 0x781   : > { %v911_v7 = vrot.slane %v910_v4, 2  ;;  %v953_v8 = vrot.slane %v952_v6, 4 }
 0x783   : > { %v954_v9 = vadd.f32 %v953_v8, %v952_v6  ;;  %v912_v10 = vadd.f32 %v911_v7, %v910_v4 }
 0x785   : > { %v955_v12 = vrot.slane %v954_v9, 2  ;;  %v913_v13 = vrot.slane %v912_v10, 1 }
 0x787   : > { %v956_v14 = vadd.f32 %v955_v12, %v954_v9  ;;  %v914_v15 = vadd.f32 %v913_v13, %v912_v10 }
 0x789   : > { %1239 = vpush %v914_v15  ;;  %v957_v17 = vrot.slane %v956_v14, 1 }
 0x78a   : > { %1241 = vpush %v925_v16 }
 0x78b   : > { %v958_v18 = vadd.f32 %v957_v17, %v956_v14 }
 0x78d   : > { %1243 = vpush %v958_v18 }
 0x7ba   : > { %s1240_s20 = spop %1239 }
 0x7bb   : > { %s927_s0 = smul.f32 2.0, %s1240_s20  ;;  %s1242_s11 = spop %1241 }
 0x7bd   : > { %s928_s16 = ssub.f32 %s1238_s29, %s927_s0  ;;  %s1379_s29 = scalar_lea.vmem %s1378_s10, 32 }
 0x7be   : > { %s1244_s13 = spop %1243  ;;  %p1381_p8 = scmp.lt.s32.totalorder %s1379_s29, %s1373_s17 }
 0x7bf   : > { %s929_s18 = sadd.f32 %s1242_s11, %s928_s16  ;;  %v965_v21 = vstv %s1244_s13 }
 0x7c0   : > { %p1382_p9 = por %p1381_p8, %p1380_p7 }
 0x7c1   : > { %v963_v19 = vstv %s929_s18 }
 0x7c2   : > { %v967_v22 = vsel %vm892_vm4, %v963_v19, %v965_v21  ;;  %p1383_p10 = pnand %p1382_p9, %p1376_p4 }
 0x7c3   : > { %969 = vst.msk [vmem:[%s277_s14] sm:$0x1] %vm968_vm9, %v967_v22 }
 0x7c4   : > { %1386 = shalt.err (!%p1383_p10)
}
 0x7c5   : > { %s1387_s20 = scalar_lea.hbm %s1017_s26, 16  ;;  %s1391_s11 = scalar_lea.hbm %s1709_s6, 32 }
 0x7c6   : > { %p1388_p11 = scmp.ne.s32.totalorder %s1017_s26, %s1387_s20  ;;  %p1392_p0 = scmp.lt.s32.totalorder %s1017_s26, %s1709_s6 }
 0x7c7   : > { %p1393_p1 = scmp.lt.s32.totalorder %s1391_s11, %s1387_s20 }
 0x7c8   : > { %p1389_p12 = pnand %p1388_p11, %p1520_p5 }
 0x7c9   : > { %p1394_p2 = por %p1393_p1, %p1392_p0 }
 0x7ca   : > { %p1390_p13 = pneg %p1389_p12 }
 0x7cc   : > { %p1395_p3 = pnand %p1394_p2, %p1390_p13 }
 0x7ce   : > { %1398 = shalt.err (!%p1395_p3)
}
 0x7cf   : > { %1247 = dma.vmem_to_hbm [thread:$0]  (%p1520_p5), %s1020_s12, 16, %s1017_s26, %s1628_s9  }
 0x7d0 PF: > { %p1261_p4 = scmp.ge.s32.totalorder %s1437_s24, 2  ;;  %s1031_s14 = sand.u32 1, %s1425_s21  }
 0x7d1   : > { %s1032_s18 = scalar_lea.sflag [#allocation4], %s1031_s14 }
 0x7d2   : > { %p1252_p7 = pnand %p1261_p4, %p1524_p6 }
 0x7d4   : > { %p1253_p8 = pneg %p1252_p7 }
 0x7d6   : > { %1416 = dma.done.wait (%p1253_p8), %s1032_s18, 128  }
 0x7d7   : > { %1418 = vsyncadd (%p1253_p8), %s1032_s18, 4294967168  ;;  %s1715_s19 = sadd.s32 4294967294, %s1437_s24  }
 0x7d8   : > { %s1040_s15 = sand.u32 1, %s1715_s19  }
 0x7d9   : > { %s1041_s17 = scalar_lea.sflag [#allocation6], %s1040_s15 }
 0x7da   : > { %1420 = dma.done.wait (%p1253_p8), %s1041_s17, 144  }
 0x7db   : > { %1422 = vsyncadd (%p1253_p8), %s1041_s17, 4294967152  ;;  %p20_p5 = scmp.ge.s32.totalorder %s1505_s27, 4   ;;  %s1716_s21 = smov %s1429_s22 }
 0x7dc   : > { %s1717_s22 = smov %s1433_s23  ;;  %s1718_s23 = smov %s1518_s30 }
 0x7dd   : > { %s1719_s24 = smov %s1505_s27  ;;  %22 = sbr.rel (!%p20_p5) target bundleno = 7 (0x7), region = 106 }
 0x7e2   :  { %1054 = vsyncpa [#allocation4], 1 }
 0x7e3   :  { %1056 = vsyncpa [#allocation4 + $0x1], 1 }
 0x7e4   :  { %1057 = vsyncpa [#allocation6], 1 }
 0x7e5   :  { %1059 = vsyncpa [#allocation6 + $0x1], 1 }

</bundles_post_ra>
